<compile_context>
chip_gen: v6e
topology: v6e:2x2x1
jax: 0.10.0
libtpu: 0.0.40
codegen_flags: <defaults>
</compile_context>

<pallas_src>
import functools
import math

import jax
import jax.numpy as jnp
from jax.experimental import pallas as pl
from jax.experimental.pallas import tpu as pltpu


# ----------------------------------------------------------------------------
# Group / lifting-kernel setup (plain JAX "glue": one-time parameter transform).
# Cyclic rotation group C_N acting on R^2, matching the PyTorch tutorial
# semantics of LiftingKernel2d / InterpolativeLiftingKernel2d.
# ----------------------------------------------------------------------------
def make_transformed_grid_R2(kernel_size: int, order: int) -> jnp.ndarray:
    """Grid over R^2 transformed by the inverse of every group element.

    Returns: (2, G, k, k) — same convention as the `transformed_grid_R2` buffer.
    """
    lin = jnp.linspace(-1.0, 1.0, kernel_size)
    g0, g1 = jnp.meshgrid(lin, lin, indexing="ij")
    grid = jnp.stack([g0, g1])                               # (2, k, k)
    thetas = jnp.arange(order, dtype=jnp.float32) * (2.0 * jnp.pi / order)
    inv = -thetas                                            # group inverse
    c, s = jnp.cos(inv), jnp.sin(inv)
    # rotation matrices, (G, 2, 2)
    rot = jnp.stack([jnp.stack([c, -s], axis=-1),
                     jnp.stack([s, c], axis=-1)], axis=-2)
    # left action on R^2 applied to the grid -> (2, G, k, k)
    return jnp.einsum("gab,bij->agij", rot, grid)


def interp2d(values: jnp.ndarray, grid: jnp.ndarray) -> jnp.ndarray:
    """Bilinear interpolation of `values` (N, k, k), defined on the canonical
    [-1,1]^2 meshgrid (ij indexing), at coordinates `grid` (2, k, k).
    Zero padding outside the domain, align_corners=True semantics.
    """
    k = values.shape[-1]
    ii = (grid[0] + 1.0) * 0.5 * (k - 1)
    jj = (grid[1] + 1.0) * 0.5 * (k - 1)
    i0 = jnp.floor(ii)
    j0 = jnp.floor(jj)
    i1 = i0 + 1.0
    j1 = j0 + 1.0
    wi = ii - i0
    wj = jj - j0

    def gather(iq, jq):
        valid = (iq >= 0) & (iq <= k - 1) & (jq >= 0) & (jq <= k - 1)
        ic = jnp.clip(iq, 0, k - 1).astype(jnp.int32)
        jc = jnp.clip(jq, 0, k - 1).astype(jnp.int32)
        v = values[:, ic, jc]                                # (N, k, k)
        return v * valid[None].astype(values.dtype)

    v00 = gather(i0, j0)
    v01 = gather(i0, j1)
    v10 = gather(i1, j0)
    v11 = gather(i1, j1)
    return (v00 * ((1 - wi) * (1 - wj))[None]
            + v01 * ((1 - wi) * wj)[None]
            + v10 * (wi * (1 - wj))[None]
            + v11 * (wi * wj)[None])


def sample_lifting_kernels(weight: jnp.ndarray, order: int) -> jnp.ndarray:
    """InterpolativeLiftingKernel2d.sample().

    weight: (OC, IC, k, k)  ->  returns (OC, G, IC, k, k)
    """
    oc, ic, k, _ = weight.shape
    tgrid = make_transformed_grid_R2(k, order)               # (2, G, k, k)
    flat_w = weight.reshape(oc * ic, k, k)
    transformed = jnp.stack(
        [interp2d(flat_w, tgrid[:, g]) for g in range(order)], axis=0
    )                                                        # (G, OC*IC, k, k)
    transformed = transformed.reshape(order, oc, ic, k, k)
    return jnp.transpose(transformed, (1, 0, 2, 3, 4))       # (OC, G, IC, k, k)


# ----------------------------------------------------------------------------
# Pallas kernel: the conv2d hot path.
# One (batch, row-tile) grid step = one big MXU matmul:
#   out[OCG, tile_h*Wout] = W[OCG, K*K*Cin] @ im2col[K*K*Cin, tile_h*Wout]
# ----------------------------------------------------------------------------
def _lifting_conv_kernel(K, tile_h, wout, x_ref, w_ref, o_ref):
    # x_ref: (1, Cin, Hp, Wp)           (bf16 or f32)
    # w_ref: (OCG, K*K*Cin)             (same dtype as x_ref)
    # o_ref: (1, OCG, tile_h*Wout)      (f32)
    cin = x_ref.shape[1]
    r = pl.program_id(1)
    row0 = pl.multiple_of(r * tile_h, tile_h)

    # One (sublane-aligned) dynamic load of the halo row window for this tile.
    x_tile = x_ref[0, :, pl.ds(row0, tile_h + K - 1), :]     # (Cin, tile_h+K-1, Wp)

    # Build the im2col slab once per tile; contraction order is (ki, kj, c),
    # matching the weight layout prepared in the wrapper.
    patches = []
    for ki in range(K):
        for kj in range(K):
            patches.append(
                x_tile[:, ki:ki + tile_h, kj:kj + wout]
                .reshape(cin, tile_h * wout))
    p = jnp.concatenate(patches, axis=0)                     # (K*K*Cin, tile_h*Wout)

    acc = jnp.dot(w_ref[...], p, preferred_element_type=jnp.float32)
    o_ref[0] = acc.astype(o_ref.dtype)                       # lane-dense store


def _pick_tile_h(hout, wout, ocg, max_tile_bytes=4 << 20):
    """Row-tile height for the spatial grid axis.

    Prefers a proper split of Hout (so there are more pipeline steps than B and
    both v7x TensorCores get work) while keeping the output row tile lane-dense
    (tile_h * Wout a multiple of 128) and the f32 output tile modest in VMEM.
    """
    def ok(t):
        return hout % t == 0 and ((t * wout) % 128 == 0 or t == hout)

    def nbytes(t):
        return t * wout * ocg * 4

    proper = [t for t in range(1, hout) if ok(t) and nbytes(t) <= max_tile_bytes]
    if proper:
        return max(proper)
    full = [t for t in range(1, hout + 1) if ok(t) and nbytes(t) <= max_tile_bytes]
    if full:
        return max(full)
    return min(t for t in range(1, hout + 1) if ok(t))


def lifting_conv2d(x, conv_kernels, padding, *, compute_dtype=jnp.bfloat16):
    """Forward pass of LiftingConv2d.

    x:            (B, Cin, H, W)           NCHW, like PyTorch
    conv_kernels: (OC, G, Cin, K, K)       from sample_lifting_kernels()
    returns:      (B, OC, G, Hout, Wout)   float32
    """
    oc, g, ic, k, _ = conv_kernels.shape
    ocg = oc * g
    b, cin, h, w = x.shape
    assert cin == ic

    hp, wp = h + 2 * padding, w + 2 * padding
    hout, wout = hp - k + 1, wp - k + 1

    # Weights: (OC, G, IC, K, K) -> (OCG, K, K, IC) -> (OCG, K*K*IC) so the
    # whole receptive field is one MXU contraction (order (ki, kj, c)).
    w_flat = (conv_kernels.reshape(ocg, ic, k, k)
              .transpose(0, 2, 3, 1)
              .reshape(ocg, k * k * ic)
              .astype(compute_dtype))

    # TODO(synk): fold the zero padding into the kernel (masked row loads)
    # instead of materializing a padded HBM copy.
    xp = jnp.pad(x, ((0, 0), (0, 0), (padding, padding), (padding, padding)))
    xp = xp.astype(compute_dtype)                            # NCHW: Cin off lanes

    tile_h = _pick_tile_h(hout, wout, ocg)
    n_row_tiles = hout // tile_h

    # Explicit VMEM budget (double-buffered blocks + weights + headroom),
    # clamped so it is safe on v7x's 64 MiB physical VMEM as well.
    in_bytes = jnp.dtype(compute_dtype).itemsize
    vmem_need = (2 * (ic * hp * wp * in_bytes + ocg * tile_h * wout * 4)
                 + ocg * k * k * ic * in_bytes + (2 << 20))
    vmem_limit = int(min(max(vmem_need, 16 << 20), 48 << 20))

    out = pl.pallas_call(
        functools.partial(_lifting_conv_kernel, k, tile_h, wout),
        out_shape=jax.ShapeDtypeStruct((b, ocg, hout * wout), jnp.float32),
        grid_spec=pltpu.PrefetchScalarGridSpec(
            num_scalar_prefetch=0,
            grid=(b, n_row_tiles),
            in_specs=[
                # Whole padded image per batch; the block index is constant
                # along the row-tile axis, so the pipeline keeps it resident.
                pl.BlockSpec((1, ic, hp, wp), lambda bi, ri: (bi, 0, 0, 0)),
                pl.BlockSpec((ocg, k * k * ic), lambda bi, ri: (0, 0)),
            ],
            out_specs=pl.BlockSpec((1, ocg, tile_h * wout),
                                   lambda bi, ri: (bi, 0, ri)),
        ),
        compiler_params=pltpu.CompilerParams(
            dimension_semantics=("parallel", "parallel"),
            vmem_limit_bytes=vmem_limit),
    )(xp, w_flat)

    # (B, OCG, Hout*Wout) -> (B, OC, G, Hout, Wout): pure reshape, no transpose.
    # Note: PyTorch's .view(..., shape[-1], shape[-2]) coincides with this for
    # the square outputs produced here.
    return out.reshape(b, oc, g, hout, wout)


# ----------------------------------------------------------------------------
# Demo / self-check
# ----------------------------------------------------------------------------
if __name__ == "__main__":
    B, IN_C, H, W = 2, 4, 16, 16
    OUT_C, K, PAD = 4, 3, 1
    GROUP_ORDER = 4        # cyclic rotation group C4

    key = jax.random.PRNGKey(0)
    kx, kw = jax.random.split(key)

    x = jax.random.normal(kx, (B, IN_C, H, W), dtype=jnp.float32)

    # kaiming_uniform_(a=sqrt(5)) -> U(-1/sqrt(fan_in), 1/sqrt(fan_in))
    fan_in = IN_C * K * K
    bound = 1.0 / math.sqrt(fan_in)
    weight = jax.random.uniform(kw, (OUT_C, IN_C, K, K),
                                minval=-bound, maxval=bound,
                                dtype=jnp.float32)

    conv_kernels = sample_lifting_kernels(weight, GROUP_ORDER)  # (OC, G, IC, K, K)

    # Pure-JAX reference (lax conv) to verify the Pallas hot path.
    ref = jax.lax.conv_general_dilated(
        x, conv_kernels.reshape(OUT_C * GROUP_ORDER, IN_C, K, K),
        window_strides=(1, 1), padding=[(PAD, PAD), (PAD, PAD)],
        dimension_numbers=("NCHW", "OIHW", "NCHW"),
    ).reshape(B, OUT_C, GROUP_ORDER, H, W)

    # f32 compute path: tight numerical check.
    out_f32 = lifting_conv2d(x, conv_kernels, PAD, compute_dtype=jnp.float32)
    out_f32 = jax.block_until_ready(out_f32)
    assert out_f32.shape == (B, OUT_C, GROUP_ORDER, H, W), out_f32.shape
    assert jnp.allclose(out_f32, ref, atol=1e-4, rtol=1e-4), (
        float(jnp.max(jnp.abs(out_f32 - ref))))

    # bf16 compute path (MXU fast path on v6e/v7x), f32 accumulation: looser tol.
    out_bf16 = lifting_conv2d(x, conv_kernels, PAD, compute_dtype=jnp.bfloat16)
    out_bf16 = jax.block_until_ready(out_bf16)
    assert out_bf16.shape == (B, OUT_C, GROUP_ORDER, H, W), out_bf16.shape
    assert jnp.allclose(out_bf16, ref, atol=5e-2, rtol=5e-2), (
        float(jnp.max(jnp.abs(out_bf16 - ref))))

    print("KERNEL_OK")
</pallas_src>

<mosaic_0001>
module attributes {stable_mosaic.version = 11 : i64} {
  func.func @_lifting_conv_kernel(%arg0: i32, %arg1: i32, %arg2: memref<1x4x18x18xf32, #tpu.memory_space<vmem>>, %arg3: memref<16x36xf32, #tpu.memory_space<vmem>>, %arg4: memref<1x16x128xf32, #tpu.memory_space<vmem>>) attributes {dimension_semantics = [#tpu.dimension_semantics<parallel>, #tpu.dimension_semantics<parallel>], iteration_bounds = array<i64: 2, 2>, scalar_prefetch = 0 : i64, scratch_operands = 0 : i64, tpu.core_type = #tpu.core_type<tc>, window_params = [{transform_indices = @transform_0, window_bounds = array<i64: 1, 4, 18, 18>}, {pipeline_mode = #tpu.pipeline_mode<synchronous>, transform_indices = @transform_1, window_bounds = array<i64: 16, 36>}, {transform_indices = @transform_2, window_bounds = array<i64: 1, 16, 128>}]} {
    %c8_i32 = arith.constant 8 : i32
    %0 = arith.muli %arg1, %c8_i32 : i32
    %1 = tpu.assume_multiple %0, 8 : i32
    %c0 = arith.constant 0 : index
    %c0_0 = arith.constant 0 : index
    %2 = arith.index_cast %1 : i32 to index
    %c0_1 = arith.constant 0 : index
    %3 = vector.load %arg2[%c0, %c0_0, %2, %c0_1] : memref<1x4x18x18xf32, #tpu.memory_space<vmem>>, vector<1x4x10x18xf32>
    %4 = vector.shape_cast %3 : vector<1x4x10x18xf32> to vector<4x10x18xf32>
    %5 = vector.extract_strided_slice %4 {offsets = [0, 0, 0], sizes = [4, 8, 16], strides = [1, 1, 1]} : vector<4x10x18xf32> to vector<4x8x16xf32>
    %6 = vector.shape_cast %5 : vector<4x8x16xf32> to vector<4x128xf32>
    %7 = vector.extract_strided_slice %4 {offsets = [0, 0, 1], sizes = [4, 8, 16], strides = [1, 1, 1]} : vector<4x10x18xf32> to vector<4x8x16xf32>
    %8 = vector.shape_cast %7 : vector<4x8x16xf32> to vector<4x128xf32>
    %9 = vector.extract_strided_slice %4 {offsets = [0, 0, 2], sizes = [4, 8, 16], strides = [1, 1, 1]} : vector<4x10x18xf32> to vector<4x8x16xf32>
    %10 = vector.shape_cast %9 : vector<4x8x16xf32> to vector<4x128xf32>
    %11 = vector.extract_strided_slice %4 {offsets = [0, 1, 0], sizes = [4, 8, 16], strides = [1, 1, 1]} : vector<4x10x18xf32> to vector<4x8x16xf32>
    %12 = vector.shape_cast %11 : vector<4x8x16xf32> to vector<4x128xf32>
    %13 = vector.extract_strided_slice %4 {offsets = [0, 1, 1], sizes = [4, 8, 16], strides = [1, 1, 1]} : vector<4x10x18xf32> to vector<4x8x16xf32>
    %14 = vector.shape_cast %13 : vector<4x8x16xf32> to vector<4x128xf32>
    %15 = vector.extract_strided_slice %4 {offsets = [0, 1, 2], sizes = [4, 8, 16], strides = [1, 1, 1]} : vector<4x10x18xf32> to vector<4x8x16xf32>
    %16 = vector.shape_cast %15 : vector<4x8x16xf32> to vector<4x128xf32>
    %17 = vector.extract_strided_slice %4 {offsets = [0, 2, 0], sizes = [4, 8, 16], strides = [1, 1, 1]} : vector<4x10x18xf32> to vector<4x8x16xf32>
    %18 = vector.shape_cast %17 : vector<4x8x16xf32> to vector<4x128xf32>
    %19 = vector.extract_strided_slice %4 {offsets = [0, 2, 1], sizes = [4, 8, 16], strides = [1, 1, 1]} : vector<4x10x18xf32> to vector<4x8x16xf32>
    %20 = vector.shape_cast %19 : vector<4x8x16xf32> to vector<4x128xf32>
    %21 = vector.extract_strided_slice %4 {offsets = [0, 2, 2], sizes = [4, 8, 16], strides = [1, 1, 1]} : vector<4x10x18xf32> to vector<4x8x16xf32>
    %22 = vector.shape_cast %21 : vector<4x8x16xf32> to vector<4x128xf32>
    %23 = tpu.concatenate %6, %8, %10, %12, %14, %16, %18, %20, %22 in 0 : vector<4x128xf32>, vector<4x128xf32>, vector<4x128xf32>, vector<4x128xf32>, vector<4x128xf32>, vector<4x128xf32>, vector<4x128xf32>, vector<4x128xf32>, vector<4x128xf32> -> vector<36x128xf32>
    %c0_2 = arith.constant 0 : index
    %c0_3 = arith.constant 0 : index
    %24 = vector.load %arg3[%c0_2, %c0_3] : memref<16x36xf32, #tpu.memory_space<vmem>>, vector<16x36xf32>
    %cst = arith.constant dense<0.000000e+00> : vector<16x128xf32>
    %25 = tpu.matmul %24, %23, %cst {dimension_numbers = #tpu.dot_dimension_numbers<[1], [0], [0], [1], [0, 0, 1, 1], [], []>} : vector<16x36xf32>, vector<36x128xf32>, vector<16x128xf32> -> vector<16x128xf32>
    %c0_4 = arith.constant 0 : index
    %c0_5 = arith.constant 0 : index
    %c0_6 = arith.constant 0 : index
    %26 = vector.load %arg4[%c0_4, %c0_5, %c0_6] : memref<1x16x128xf32, #tpu.memory_space<vmem>>, vector<1x16x128xf32>
    %27 = vector.shape_cast %26 : vector<1x16x128xf32> to vector<16x128xf32>
    %28 = vector.shape_cast %25 : vector<16x128xf32> to vector<1x16x128xf32>
    tpu.vector_store %arg4[%c0_4, %c0_5, %c0_6], %28 {strides = array<i32>} : memref<1x16x128xf32, #tpu.memory_space<vmem>>, vector<1x16x128xf32>,
    return
  }
  func.func @transform_0(%arg0: i32, %arg1: i32) -> (i32, i32, i32, i32) {
    %c0_i32 = arith.constant 0 : i32
    %c0_i32_0 = arith.constant 0 : i32
    %c0_i32_1 = arith.constant 0 : i32
    %c0_i32_2 = arith.constant 0 : i32
    return %arg0, %c0_i32, %c0_i32_0, %c0_i32_1 : i32, i32, i32, i32
  }
  func.func @transform_1(%arg0: i32, %arg1: i32) -> (i32, i32) {
    %c0_i32 = arith.constant 0 : i32
    %c0_i32_0 = arith.constant 0 : i32
    %c0_i32_1 = arith.constant 0 : i32
    return %c0_i32, %c0_i32_0 : i32, i32
  }
  func.func @transform_2(%arg0: i32, %arg1: i32) -> (i32, i32, i32) {
    %c0_i32 = arith.constant 0 : i32
    %c0_i32_0 = arith.constant 0 : i32
    return %arg0, %c0_i32, %arg1 : i32, i32, i32
  }
}

</mosaic_0001>

<bundles_post_ra>
// kernel: tpu_custom_call.1
= control target key start
LH: loop header
LB: loop body
LE: loop exit
PB: predicated region body
PF: predicated region fallthrough
CT: control target
= control target key end

     0   :  { %7 = vsyncpa [#allocation3], 0  ;;  %s2328_s0 = inlined_call_operand.vmem [shape: f32[2,4,18,18], index: 0, kind: input, shape index: {}]   ;;  %s2329_s1 = inlined_call_operand.vmem [shape: f32[16,36], index: 1, kind: input, shape index: {}]   ;;  %s2330_s2 = inlined_call_operand.hbm [shape: f32[2,16,256], index: 2, kind: output, shape index: {}]  }
   0x1   :  { %9 = vsyncpa [#allocation3 + $0x1], 0  ;;  %s1664_s9 = smov 0   ;;  %s1666_s10 = smov 0  }
   0x2   :  { %s1668_s11 = smov 0   ;;  %s1670_s12 = smov 0  }
   0x3   :  { %s1672_s13 = smov 0   ;;  %s1674_s14 = smov 0  }
   0x4   :  { %s1676_s15 = smov 0   ;;  %s1678_s16 = smov 0  }
   0x5 LB: > { %s1412_s17 = sadd.s32 4294967295, %s1631_s16   ;;  %s1413_s18 = sadd.s32 4294967294, %s1631_s16   ;;  %s1631_s16 = sphi %s1678_s16, %s15_s16   ;;  %s1627_s15 = sphi %s1676_s15, %s2339_s15   ;;  %s1623_s14 = sphi %s1674_s14, %s2338_s14   ;;  %s1619_s13 = sphi %s1672_s13, %s2337_s13   ;;  %s1615_s12 = sphi %s1670_s12, %s2336_s12   ;;  %s1611_s11 = sphi %s1668_s11, %s2335_s11   ;;  %s1607_s10 = sphi %s1666_s10, %s2334_s10   ;;  %s1603_s9 = sphi %s1664_s9, %s2333_s9  }
   0x6   : > { %s24_s19 = sadd.s32 1, %s1623_s14  ;;  %s27_s20 = sadd.s32 1, %s1627_s15 }
   0x7   : > { %p25_p0 = scmp.ge.s32.totalorder %s24_s19, 2  ;;  %p93_p1 = scmp.ne.s32.totalorder %s1611_s11, %s1607_s10 }
   0x8   : > { %p94_p2 = scmp.eq.s32.totalorder %s1412_s17, 3  ;;  %p99_p5 = scmp.ne.s32.totalorder %s1607_s10, %s1603_s9 }
   0x9   : > { %s2341_s19 = smov (%p25_p0, %s24_s19), 0  ;;  %s2343_s20 = smov (!%p25_p0, %s27_s20), %s1627_s15 }
   0xa   : > { %s79_s21 = ssub.s32 %s1623_s14, %s2341_s19  ;;  %p1715_p3 = por %p94_p2, %p93_p1 }
   0xb   : > { %p29_p4 = scmp.ge.s32.totalorder %s2343_s20, 2  ;;  %p100_p6 = scmp.eq.s32.totalorder %s1413_s18, 3 }
   0xc   : > { %p1416_p7 = scmp.ge.s32.totalorder %s1631_s16, 1  ;;  %p129_p9 = scmp.lt.s32.totalorder %s1631_s16, 5 }
   0xd   : > { %s2345_s20 = smov (%p29_p4, %s2343_s20), 0  ;;  %p1724_p8 = por %p100_p6, %p99_p5 }
   0xe   : > { %s78_s24 = ssub.s32 %s1627_s15, %s2345_s20  ;;  %s83_s25 = sadd.s32 1, %s1611_s11 }
   0xf   : > { %s80_s26 = sor.u32 %s79_s21, %s78_s24  ;;  %p130_p10 = pnand %p1416_p7, %p129_p9 }
  0x10   : > { %p81_p11 = scmp.eq.s32.totalorder %s80_s26, 0  ;;  %p151_p12 = scmp.lt.s32.totalorder (!%p130_p10), %s1619_s13, 1 }
  0x11   : > { %133 = sbr.rel (%p130_p10) target bundleno = 621 (0x26d), region = 28  ;;  %s1419_s30 = sshll.u32 (!%p130_p10), %s1615_s12, 3 }
  0x12   : > { %s1733_s27 = scalar_select %p81_p11, %s1611_s11, %s83_s25  }
  0x13   : > { %s1633_s7 = smov (!%p130_p10), 127   ;;  %s1634_s8 = smov (!%p130_p10), 126  }
  0x14   : > { %s1638_s17 = smov (!%p130_p10), 16   ;;  %s1639_s18 = smov (!%p130_p10), 32  }
  0x15   : > { %s1640_s21 = smov (!%p130_p10), 48   ;;  %s1641_s24 = smov (!%p130_p10), 64  }
  0x16   : > { %s152_s28 = scalar_select %p151_p12, %s1619_s13, 1  ;;  %vm864_vm0 = vcmask 1045504   ;;  %vm514_vm1 = vcmask 1046528   ;;  %v1635_v32 = vmov 1983009808   ;;  %v171_v34 = vlaneseq }
  0x17   : > { %v169_v33 = vunpack.c.l.s4 %v1635_v32  ;;  %v1636_v42 = vmov 1934713408   ;;  %v1637_v56 = vmov 0.0   ;;  %s1642_s25 = smov 80   ;;  %s1643_s26 = smov 96   ;;  %vm262_vm2 = vcmask 130048  }
  0x18   : > { %s1448_s29 = smul.u32 96, %s152_s28  ;;  %v172_v36 = vshrl.u32 %v171_v34, 7  ;;  %v201_v43 = vunpack.c.l.s4 %v1636_v42  ;;  %s1644_s28 = smov 112   ;;  %vm264_vm3 = vcmask 261120   ;;  %vm266_vm4 = vcmask 392192  }
  0x19   : > { %v170_v35 = vunpack.c.0.s8 %v169_v33  ;;  %vm268_vm5 = vcmask 523264   ;;  %vm270_vm6 = vcmask 654336   ;;  %vm272_vm7 = vcmask 785408  }
  0x1a   : > { %s155_s5 = scalar_lea.vmem %s2328_s0, %s1448_s29  ;;  %v202_v48 = vunpack.c.0.s8 %v201_v43  ;;  %vm1233_vm8 = vcmask 293888   ;;  %vm274_vm9 = vcmask 916480   ;;  %vm1226_vm10 = vcmask 1043456  }
  0x1b   : > { %s157_s6 = scalar_lea.vmem %s155_s5, %s1419_s30  ;;  %v1792_v39 = vsub.s32 %v170_v35, %v172_v36  ;;  %s148_s5 = sand.u32 1, %s1607_s10  }
  0x1c   : > { %v1741_v0 = vld [vmem:[%s157_s6 + $0x30] sm:$0xff]  ;;  %v163_v1 = vld [vmem:[%s157_s6 + $0x38] sm:$0x3]  ;;  %v1743_v2 = vld [vmem:[%s157_s6] sm:$0xff]  ;;  %v1811_v50 = vsub.s32 %v202_v48, %v172_v36 }
  0x1d   : > { %v871_v3 = vrot.slane %v1741_v0, 2  ;;  %v872_v4 = vrot.slane %v163_v1, 2  ;;  %v159_v5 = vld [vmem:[%s157_s6 + $0x8] sm:$0x3]  ;;  %v865_v6 = vrot.slane %v1743_v2, 2  ;;  %v1750_v11 = vld [vmem:[%s157_s6 + $0x18] sm:$0xff] }
  0x1e   : > { %v1747_v7 = vld [vmem:[%s157_s6 + $0x48] sm:$0xff]  ;;  %v866_v8 = vrot.slane %v159_v5, 2  ;;  %v165_v9 = vld [vmem:[%s157_s6 + $0x50] sm:$0x3]  ;;  %v161_v14 = vld [vmem:[%s157_s6 + $0x20] sm:$0x3] }
  0x1f   : > { %v874_v10 = vrot.slane %v1747_v7, 2  ;;  %v1753_v12 = vsel %vm864_vm0, %v871_v3, %v872_v4  ;;  %v875_v13 = vrot.slane %v165_v9, 2  ;;  %v868_v15 = vrot.slane %v1750_v11, 2  ;;  %s1417_s6 = sshll.u32 %s148_s5, 4 }
  0x20   : > { %988 = vrot.lane.b32.xlu1 %v1753_v12, %s1633_s7  ;;  %v1759_v16 = vsel %vm864_vm0, %v865_v6, %v866_v8  ;;  %v869_v17 = vrot.slane %v161_v14, 2  ;;  %v518_v20 = vrot.slane %v1750_v11, 1  ;;  %v519_v21 = vrot.slane %v161_v14, 1 }
  0x21   : > { %984 = vrot.lane.b32.xlu0 %v1759_v16, %s1633_s7  ;;  %v1764_v18 = vsel %vm864_vm0, %v874_v10, %v875_v13  ;;  %v515_v22 = vrot.slane %v1743_v2, 1  ;;  %v516_v23 = vrot.slane %v159_v5, 1  ;;  %v524_v25 = vrot.slane %v1747_v7, 1 }
  0x22   : > { %v1767_v19 = vsel %vm864_vm0, %v868_v15, %v869_v17  ;;  %v520_v24 = vsel %vm514_vm1, %v518_v20, %v519_v21  ;;  %v525_v26 = vrot.slane %v165_v9, 1  ;;  %v521_v28 = vrot.slane %v1741_v0, 1 }
  0x23   : > { %v517_v27 = vsel %vm514_vm1, %v515_v22, %v516_v23  ;;  %v522_v29 = vrot.slane %v163_v1, 1  ;;  %v881_v40 = vcombine.low %v1759_v16, %v1753_v12  ;;  %v897_v41 = vcombine.low %v1767_v19, %v1764_v18 }
  0x24   : > { %990 = vrot.lane.b32.xlu1 %v1764_v18, %s1633_s7  ;;  %v526_v30 = vsel %vm514_vm1, %v524_v25, %v525_v26  ;;  %v882_v59 = vcombine.high %v1759_v16, %v1753_v12  ;;  %v898_v60 = vcombine.high %v1767_v19, %v1764_v18  ;;  %v166_v13 = vcombine.low %v1743_v2, %v1741_v0 }
  0x25   : > { %986 = vrot.lane.b32.xlu0 %v1767_v19, %s1633_s7  ;;  %v523_v31 = vsel %vm514_vm1, %v521_v28, %v522_v29  ;;  %v547_v37 = vcombine.low %v520_v24, %v526_v30  ;;  %v889_v46 = vrot.slane %v881_v40, %v1792_v39  ;;  %v905_v47 = vrot.slane %v897_v41, %v1792_v39 }
  0x26   : > { %v531_v38 = vcombine.low %v517_v27, %v523_v31  ;;  %v548_v54 = vcombine.high %v520_v24, %v526_v30  ;;  %v532_v55 = vcombine.high %v517_v27, %v523_v31  ;;  %v896_v5 = vrot.slane %v882_v59, %v1792_v39 }
  0x27   : > { %v555_v44 = vrot.slane %v547_v37, %v1792_v39  ;;  %v913_v51 = vcombine.low %v889_v46, %v905_v47  ;;  %v914_v62 = vcombine.high %v889_v46, %v905_v47  ;;  %v912_v6 = vrot.slane %v898_v60, %v1792_v39 }
  0x28   : > { %1101 = vrot.lane.b32.xlu1 %v1767_v19, %s1634_s8  ;;  %v539_v45 = vrot.slane %v531_v38, %v1792_v39  ;;  %v1838_v1 = vrot.slane %v532_v55, %v1792_v39  ;;  %v1841_v3 = vrot.slane %v548_v54, %v1792_v39  ;;  %v182_v14 = vcombine.low %v1750_v11, %v1747_v7 }
  0x29   : > { %1099 = vrot.lane.b32.xlu0 %v1759_v16, %s1634_s8  ;;  %v1821_v53 = vrot.slane %v913_v51, %v1811_v50  ;;  %v928_v4 = vrot.slane %v914_v62, %v1811_v50  ;;  %v174_v17 = vrot.slane %v166_v13, %v1792_v39  ;;  %v930_v22 = vcombine.high %v896_v5, %v912_v6 }
  0x2a   : > { %v563_v49 = vcombine.low %v539_v45, %v555_v44  ;;  %v564_v58 = vcombine.high %v539_v45, %v555_v44  ;;  %v579_v9 = vcombine.low %v1838_v1, %v1841_v3 }
  0x2b   : > { %v945_v61 = vcombine.high %v1821_v53, %v1637_v56  ;;  %v946_v10 = vcombine.high %v928_v4, %v1637_v56  ;;  %v944_v25 = vrot.slane %v930_v22, %v1811_v50 }
  0x2c   : > { %1105 = vrot.lane.b32.xlu1 %v1764_v18, %s1634_s8  ;;  %v1816_v52 = vrot.slane %v563_v49, %v1811_v50  ;;  %v578_v63 = vrot.slane %v564_v58, %v1811_v50  ;;  %v587_v15 = vrot.slane %v579_v9, %v1811_v50  ;;  %v190_v18 = vrot.slane %v182_v14, %v1792_v39 }
  0x2d   : > { %1103 = vrot.lane.b32.xlu0 %v1753_v12, %s1634_s8  ;;  %v929_v12 = vcombine.low %v896_v5, %v912_v6  ;;  %v948_v28 = vcombine.high %v944_v25, %v1637_v56 }
  0x2e   : > { %v595_v57 = vcombine.high %v1816_v52, %v1637_v56  ;;  %v596_v8 = vcombine.high %v578_v63, %v1637_v56  ;;  %v597_v19 = vcombine.high %v587_v15, %v1637_v56  ;;  %v199_v20 = vcombine.high %v174_v17, %v190_v18 }
  0x2f   : > { %v937_v16 = vrot.slane %v929_v12, %v1811_v50  ;;  %v198_v23 = vcombine.low %v174_v17, %v190_v18 }
  0x30   : > { %751 = vrot.lane.b32.xlu1 %v520_v24, %s1634_s8 }
  0x31   : > { %749 = vrot.lane.b32.xlu0 %v517_v27, %s1634_s8  ;;  %v947_v21 = vcombine.high %v937_v16, %v1637_v56  ;;  %v1874_v26 = vrot.slane %v198_v23, %v1811_v50 }
  0x34   : > { %755 = vrot.lane.b32.xlu1 %v526_v30, %s1634_s8 }
  0x35   : > { %753 = vrot.lane.b32.xlu0 %v523_v31, %s1634_s8 }
  0x38   : > { %636 = vrot.lane.b32.xlu1 %v520_v24, %s1633_s7  ;;  %v1869_v24 = vrot.slane %v199_v20, %v1811_v50 }
  0x39   : > { %634 = vrot.lane.b32.xlu0 %v517_v27, %s1633_s7  ;;  %v230_v27 = vcombine.high %v1874_v26, %v1637_v56 }
  0x3c   : > { %640 = vrot.lane.b32.xlu1 %v526_v30, %s1633_s7 }
  0x3d   : > { %638 = vrot.lane.b32.xlu0 %v523_v31, %s1633_s7 }
  0x40   : > { %282 = vrot.lane.b32.xlu1 %v1750_v11, %s1633_s7 }
  0x41   : > { %280 = vrot.lane.b32.xlu0 %v1743_v2, %s1633_s7 }
  0x44   : > { %286 = vrot.lane.b32.xlu1 %v1747_v7, %s1633_s7 }
  0x45   : > { %284 = vrot.lane.b32.xlu0 %v1741_v0, %s1633_s7  ;;  %s1424_s7 = sshll.u32 %s1619_s13, 2  ;;  %s1645_s13 = smov [#allocation2]  }
  0x46   : > { %s1543_s29 = sshll.u32 %s1645_s13, 4  ;;  %s1544_s29 = int_to_ptr.vmem [resolvable:$false] %s1543_s29 }
  0x47   : > { %s1545_s30 = scalar_lea.vmem %s1544_s29, 512 }
  0x48   : > { %397 = vrot.lane.b32.xlu1 %v1750_v11, %s1634_s8 }
  0x49   : > { %395 = vrot.lane.b32.xlu0 %v1743_v2, %s1634_s8 }
  0x4c   : > { %401 = vrot.lane.b32.xlu1 %v1747_v7, %s1634_s8 }
  0x4d   : > { %399 = vrot.lane.b32.xlu0 %v1741_v0, %s1634_s8  ;;  %s1332_s8 = sadd.s32 %s1615_s12, %s1424_s7 }
  0x50   : > { %600 = vrot.lane.b32.xlu1 %v595_v57, %s1638_s17 }
  0x51   : > { %950 = vrot.lane.b32.xlu0 %v945_v61, %s1638_s17 }
  0x54   : > { %604 = vrot.lane.b32.xlu1 %v578_v63, %s1639_s18 }
  0x55   : > { %954 = vrot.lane.b32.xlu0 %v928_v4, %s1639_s18 }
  0x58   : > { %608 = vrot.lane.b32.xlu1 %v596_v8, %s1640_s21 }
  0x59   : > { %958 = vrot.lane.b32.xlu0 %v946_v10, %s1640_s21 }
  0x5c   : > { %612 = vrot.lane.b32.xlu1 %v587_v15, %s1641_s24 }
  0x5d   : > { %962 = vrot.lane.b32.xlu0 %v937_v16, %s1641_s24 }
  0x60   : > { %616 = vrot.lane.b32.xlu1 %v597_v19, %s1642_s25 }
  0x61   : > { %966 = vrot.lane.b32.xlu0 %v947_v21, %s1642_s25 }
  0x64   : > { %239 = vrot.lane.b32.xlu1 %v1869_v24, %s1639_s18 }
  0x65   : > { %970 = vrot.lane.b32.xlu0 %v944_v25, %s1643_s26 }
  0x69   : > { %235 = vrot.lane.b32.xlu0 %v230_v27, %s1638_s17 }
  0x6d   : > { %974 = vrot.lane.b32.xlu0 %v948_v28, %s1644_s28 }
  0x92   : > { %v1884_v29 = vpop.permute.xlu1 %988 }
  0x93   : > { %v1886_v30 = vpop.permute.xlu0 %984 }
  0x94   : > { %v996_v10 = vcombine.low %v1886_v30, %v1884_v29 }
  0x96   : > { %v1888_v31 = vpop.permute.xlu1 %990  ;;  %v1941_v21 = vrot.slane %v996_v10, %v1792_v39 }
  0x97   : > { %v1890_v32 = vpop.permute.xlu0 %986 }
  0x98   : > { %v1012_v63 = vcombine.low %v1890_v32, %v1888_v31 }
  0x9a   : > { %v1892_v33 = vpop.permute.xlu1 %1101  ;;  %v1937_v15 = vrot.slane %v1012_v63, %v1792_v39 }
  0x9b   : > { %v1894_v34 = vpop.permute.xlu0 %1099 }
  0x9e   : > { %v1896_v35 = vpop.permute.xlu1 %1105 }
  0x9f   : > { %v1898_v36 = vpop.permute.xlu0 %1103 }
  0xa2   : > { %v1900_v37 = vpop.permute.xlu1 %751 }
  0xa3   : > { %v1902_v38 = vpop.permute.xlu0 %749 }
  0xa6   : > { %v1904_v40 = vpop.permute.xlu1 %755 }
  0xa7   : > { %v1906_v41 = vpop.permute.xlu0 %753  ;;  %v777_v22 = vcombine.low %v1900_v37, %v1904_v40 }
  0xa8   : > { %v761_v27 = vcombine.low %v1902_v38, %v1906_v41 }
  0xaa   : > { %v1908_v42 = vpop.permute.xlu1 %636 }
  0xab   : > { %v1910_v43 = vpop.permute.xlu0 %634 }
  0xae   : > { %v1912_v44 = vpop.permute.xlu1 %640 }
  0xaf   : > { %v1914_v45 = vpop.permute.xlu0 %638 }
  0xb2   : > { %v283_v46 = vpop.permute.xlu1 %282 }
  0xb3   : > { %v281_v47 = vpop.permute.xlu0 %280 }
  0xb6   : > { %v287_v48 = vpop.permute.xlu1 %286 }
  0xb7   : > { %v308_v49 = vcombine.low %v283_v46, %v287_v48  ;;  %v309_v51 = vcombine.high %v283_v46, %v287_v48  ;;  %v285_v54 = vpop.permute.xlu0 %284 }
  0xb8   : > { %v292_v55 = vcombine.low %v281_v47, %v285_v54  ;;  %v293_v57 = vcombine.high %v281_v47, %v285_v54  ;;  %v1029_v54 = vcombine.high %v1941_v21, %v1937_v15 }
  0xb9   : > { %v316_v58 = vrot.slane %v308_v49, %v1792_v39  ;;  %v1918_v59 = vrot.slane %v309_v51, %v1792_v39  ;;  %v997_v49 = vcombine.high %v1886_v30, %v1884_v29  ;;  %v1013_v51 = vcombine.high %v1890_v32, %v1888_v31 }
  0xba   : > { %v300_v60 = vrot.slane %v292_v55, %v1792_v39  ;;  %v1922_v61 = vrot.slane %v293_v57, %v1792_v39  ;;  %v398_v62 = vpop.permute.xlu1 %397  ;;  %v1127_v29 = vcombine.low %v1892_v33, %v1896_v35  ;;  %v1111_v30 = vcombine.low %v1894_v34, %v1898_v36 }
  0xbb   : > { %v396_v4 = vpop.permute.xlu0 %395  ;;  %v1975_v31 = vrot.slane %v777_v22, %v1792_v39  ;;  %v1980_v32 = vrot.slane %v761_v27, %v1792_v39  ;;  %v778_v22 = vcombine.high %v1900_v37, %v1904_v40 }
  0xbc   : > { %v324_v5 = vcombine.low %v300_v60, %v316_v58  ;;  %v325_v6 = vcombine.high %v300_v60, %v316_v58  ;;  %v340_v8 = vcombine.low %v1922_v61, %v1918_v59  ;;  %v341_v9 = vcombine.high %v1922_v61, %v1918_v59 }
  0xbe   : > { %v402_v12 = vpop.permute.xlu1 %401  ;;  %v339_v13 = vrot.slane %v325_v6, %v1811_v50  ;;  %v1934_v14 = vrot.slane %v324_v5, %v1811_v50 }
  0xbf   : > { %v423_v16 = vcombine.low %v398_v62, %v402_v12  ;;  %v424_v17 = vcombine.high %v398_v62, %v402_v12  ;;  %v400_v18 = vpop.permute.xlu0 %399  ;;  %v1988_v12 = vrot.slane %v1013_v51, %v1792_v39 }
  0xc0   : > { %v407_v19 = vcombine.low %v396_v4, %v400_v18  ;;  %v408_v20 = vcombine.high %v396_v4, %v400_v18  ;;  %365 = vrot.lane.b32.xlu1 %v339_v13, %s1639_s18  ;;  %v356_v47 = vcombine.high %v1934_v14, %v1637_v56  ;;  %v357_v4 = vcombine.high %v339_v13, %v1637_v56 }
  0xc1   : > { %v431_v23 = vrot.slane %v423_v16, %v1792_v39  ;;  %v1947_v25 = vrot.slane %v424_v17, %v1792_v39  ;;  %v1112_v18 = vcombine.high %v1894_v34, %v1898_v36  ;;  %v1011_v34 = vrot.slane %v997_v49, %v1792_v39 }
  0xc2   : > { %v415_v28 = vrot.slane %v407_v19, %v1792_v39  ;;  %v1953_v46 = vrot.slane %v408_v20, %v1792_v39  ;;  %v601_v48 = vpop.permute.xlu1 %600  ;;  %v1999_v19 = vrot.slane %v1127_v29, %v1792_v39  ;;  %v2002_v20 = vrot.slane %v1111_v30, %v1792_v39 }
  0xc3   : > { %v951_v55 = vpop.permute.xlu0 %950  ;;  %v627_v57 = vsel %vm262_vm2, %v1816_v52, %v601_v48  ;;  %v2012_v36 = vrot.slane %v1029_v54, %v1811_v50  ;;  %v1044_v37 = vcombine.low %v1011_v34, %v1988_v12  ;;  %v792_v49 = vrot.slane %v778_v22, %v1792_v39 }
  0xc4   : > { %v439_v58 = vcombine.low %v415_v28, %v431_v23  ;;  %v440_v60 = vcombine.high %v415_v28, %v431_v23  ;;  %v455_v62 = vcombine.low %v1953_v46, %v1947_v25  ;;  %v456_v63 = vcombine.high %v1953_v46, %v1947_v25  ;;  %361 = vrot.lane.b32.xlu1 %v356_v47, %s1638_s17 }
  0xc5   : > { %v977_v52 = vsel %vm262_vm2, %v1821_v53, %v951_v55  ;;  %v1128_v53 = vcombine.high %v1892_v33, %v1896_v35  ;;  %v762_v33 = vcombine.high %v1902_v38, %v1906_v41  ;;  %v794_v35 = vcombine.high %v1980_v32, %v1975_v31 }
  0xc6   : > { %v454_v5 = vrot.slane %v440_v60, %v1811_v50  ;;  %v1985_v6 = vrot.slane %v439_v58, %v1811_v50  ;;  %v605_v10 = vpop.permute.xlu1 %604  ;;  %v1126_v41 = vrot.slane %v1112_v18, %v1792_v39  ;;  %v1144_v48 = vcombine.high %v2002_v20, %v1999_v19 }
  0xc7   : > { %v955_v16 = vpop.permute.xlu0 %954  ;;  %v628_v17 = vsel %vm264_vm3, %v627_v57, %v605_v10  ;;  %v1142_v40 = vrot.slane %v1128_v53, %v1792_v39  ;;  %v776_v51 = vrot.slane %v762_v33, %v1792_v39  ;;  %v662_v54 = vcombine.low %v1908_v42, %v1912_v44 }
  0xc8   : > { %369 = vrot.lane.b32.xlu1 %v357_v4, %s1640_s21  ;;  %480 = vrot.lane.b32.xlu0 %v454_v5, %s1639_s18  ;;  %v978_v13 = vsel %vm264_vm3, %v977_v52, %v955_v16  ;;  %v471_v23 = vcombine.high %v1985_v6, %v1637_v56  ;;  %v646_v55 = vcombine.low %v1910_v43, %v1914_v45 }
  0xc9   : > { %v808_v57 = vrot.slane %v794_v35, %v1811_v50  ;;  %v472_v58 = vcombine.high %v454_v5, %v1637_v56  ;;  %v1159_v4 = vcombine.low %v1126_v41, %v1142_v40  ;;  %v1052_v10 = vrot.slane %v1044_v37, %v1811_v50 }
  0xca   : > { %v609_v27 = vpop.permute.xlu1 %608  ;;  %v809_v16 = vcombine.low %v776_v51, %v792_v49  ;;  %v654_v53 = vrot.slane %v646_v55, %v1792_v39  ;;  %v1158_v5 = vrot.slane %v1144_v48, %v1811_v50  ;;  %v1045_v35 = vcombine.high %v1011_v34, %v1988_v12 }
  0xcb   : > { %v959_v28 = vpop.permute.xlu0 %958  ;;  %v629_v47 = vsel %vm266_vm4, %v628_v17, %v609_v27  ;;  %v670_v17 = vrot.slane %v662_v54, %v1792_v39  ;;  %v663_v27 = vcombine.high %v1908_v42, %v1912_v44  ;;  %v1160_v12 = vcombine.high %v1126_v41, %v1142_v40 }
  0xcc   : > { %1069 = vrot.lane.b32.xlu1 %v2012_v36, %s1639_s18  ;;  %476 = vrot.lane.b32.xlu0 %v471_v23, %s1638_s17  ;;  %v979_v38 = vsel %vm266_vm4, %v978_v13, %v959_v28  ;;  %v1167_v23 = vrot.slane %v1159_v4, %v1811_v50  ;;  %v647_v28 = vcombine.high %v1910_v43, %v1914_v45 }
  0xcd   : > { %v817_v37 = vrot.slane %v809_v16, %v1811_v50  ;;  %v793_v34 = vcombine.low %v1980_v32, %v1975_v31  ;;  %v1059_v42 = vrot.slane %v1045_v35, %v1811_v50  ;;  %v810_v44 = vcombine.high %v776_v51, %v792_v49 }
  0xce   : > { %v613_v60 = vpop.permute.xlu1 %612  ;;  %v677_v43 = vrot.slane %v663_v27, %v1792_v39  ;;  %v661_v45 = vrot.slane %v647_v28, %v1792_v39  ;;  %v1028_v55 = vcombine.low %v1941_v21, %v1937_v15  ;;  %v1174_v31 = vrot.slane %v1160_v12, %v1811_v50 }
  0xcf   : > { %v963_v29 = vpop.permute.xlu0 %962  ;;  %v630_v30 = vsel %vm268_vm5, %v629_v47, %v613_v60  ;;  %v679_v47 = vcombine.high %v654_v53, %v670_v17  ;;  %v824_v41 = vrot.slane %v810_v44, %v1811_v50  ;;  %v2073_v32 = vrot.slane %v793_v34, %v1811_v50 }
  0xd0   : > { %834 = vrot.lane.b32.xlu1 %v808_v57, %s1639_s18  ;;  %484 = vrot.lane.b32.xlu0 %v472_v58, %s1640_s21  ;;  %v980_v52 = vsel %vm268_vm5, %v979_v38, %v963_v29  ;;  %v694_v40 = vcombine.low %v661_v45, %v677_v43  ;;  %v1143_v49 = vcombine.low %v2002_v20, %v1999_v19 }
  0xd1   : > { %v693_v54 = vrot.slane %v679_v47, %v1811_v50  ;;  %v825_v51 = vcombine.high %v2073_v32, %v1637_v56  ;;  %v2083_v21 = vrot.slane %v1028_v55, %v1811_v50  ;;  %v1061_v58 = vcombine.high %v2012_v36, %v1637_v56 }
  0xd2   : > { %v617_v18 = vpop.permute.xlu1 %616  ;;  %v702_v15 = vrot.slane %v694_v40, %v1811_v50  ;;  %v2092_v19 = vrot.slane %v1143_v49, %v1811_v50  ;;  %v678_v20 = vcombine.low %v654_v53, %v670_v17  ;;  %v826_v29 = vcombine.high %v808_v57, %v1637_v56 }
  0xd3   : > { %v967_v13 = vpop.permute.xlu0 %966  ;;  %v2043_v22 = vsel %vm270_vm6, %v630_v30, %v617_v18  ;;  %v1060_v60 = vcombine.high %v2083_v21, %v1637_v56  ;;  %v1062_v36 = vcombine.high %v1052_v10, %v1637_v56  ;;  %v827_v57 = vcombine.high %v817_v37, %v1637_v56 }
  0xd4   : > { %1077 = vrot.lane.b32.xlu1 %v1052_v10, %s1641_s24  ;;  %1184 = vrot.lane.b32.xlu0 %v1158_v5, %s1639_s18  ;;  %v981_v33 = vsel %vm270_vm6, %v980_v52, %v967_v13  ;;  %v1175_v30 = vcombine.high %v2092_v19, %v1637_v56  ;;  %v1176_v52 = vcombine.high %v1158_v5, %v1637_v56 }
  0xd5   : > { %v2104_v4 = vrot.slane %v678_v20, %v1811_v50  ;;  %v1063_v10 = vcombine.high %v1059_v42, %v1637_v56  ;;  %v1177_v17 = vcombine.high %v1167_v23, %v1637_v56  ;;  %v1178_v53 = vcombine.high %v1174_v31, %v1637_v56 }
  0xd6   : > { %v711_v5 = vcombine.high %v693_v54, %v1637_v56  ;;  %v828_v18 = vcombine.high %v824_v41, %v1637_v56  ;;  %v712_v13 = vcombine.high %v702_v15, %v1637_v56  ;;  %v695_v35 = vcombine.high %v661_v45, %v677_v43  ;;  %v1231_v43 = vld [vmem:[%s2329_s1] sm:$0xff]  ;;  %v2184_v25 = vpop.permute.xlu1 %239 }
  0xd7   : > { %v971_v38 = vpop.permute.xlu0 %970  ;;  %v710_v16 = vcombine.high %v2104_v4, %v1637_v56  ;;  %v348_v27 = vrot.slane %v340_v8, %v1811_v50  ;;  %v231_v8 = vcombine.high %v1869_v24, %v1637_v56  ;;  %v355_v12 = vrot.slane %v341_v9, %v1811_v50  ;;  %1445 = vmatprep.mubr.msk.f32.mxu0 %vm1233_vm8, %v1231_v43 }
  0xd8   : > { %842 = vrot.lane.b32.xlu1 %v817_v37, %s1641_s24  ;;  %1192 = vrot.lane.b32.xlu0 %v1167_v23, %s1641_s24  ;;  %v2058_v48 = vsel %vm272_vm7, %v981_v33, %v971_v38  ;;  %v580_v33 = vcombine.high %v1838_v1, %v1841_v3  ;;  %v463_v23 = vrot.slane %v455_v62, %v1811_v50 }
  0xd9   : > { %v167_v1 = vcombine.high %v1743_v2, %v1741_v0  ;;  %v183_v3 = vcombine.high %v1750_v11, %v1747_v7  ;;  %v709_v47 = vrot.slane %v695_v35, %v1811_v50  ;;  %v358_v38 = vcombine.high %v348_v27, %v1637_v56 }
  0xda   : > { %v594_v28 = vrot.slane %v580_v33, %v1811_v50  ;;  %v473_v7 = vcombine.high %v463_v23, %v1637_v56  ;;  %v359_v44 = vcombine.high %v355_v12, %v1637_v56 }
  0xdb   : > { %v181_v62 = vrot.slane %v167_v1, %v1792_v39  ;;  %v197_v37 = vrot.slane %v183_v3, %v1792_v39  ;;  %v713_v24 = vcombine.high %v709_v47, %v1637_v56  ;;  %v470_v39 = vrot.slane %v456_v63, %v1811_v50  ;;  %v2186_v46 = vpop.permute.xlu0 %235 }
  0xdc   : > { %1085 = vrot.lane.b32.xlu1 %v1059_v42, %s1643_s26  ;;  %719 = vrot.lane.b32.xlu0 %v693_v54, %s1639_s18  ;;  %v598_v0 = vcombine.high %v594_v28, %v1637_v56 }
  0xdd   : > { %v214_v2 = vcombine.low %v181_v62, %v197_v37  ;;  %v215_v42 = vcombine.high %v181_v62, %v197_v37  ;;  %v474_v61 = vcombine.high %v470_v39, %v1637_v56 }
  0xdf   : > { %v222_v11 = vrot.slane %v214_v2, %v1811_v50  ;;  %v229_v59 = vrot.slane %v215_v42, %v1811_v50  ;;  %v975_v45 = vpop.permute.xlu0 %974 }
  0xe0   : > { %850 = vrot.lane.b32.xlu1 %v824_v41, %s1643_s26  ;;  %1200 = vrot.lane.b32.xlu0 %v1174_v31, %s1643_s26 }
  0xe1   : > { %v232_v34 = vcombine.high %v222_v11, %v1637_v56  ;;  %v233_v9 = vcombine.high %v229_v59, %v1637_v56 }
  0xe4   : > { %830 = vrot.lane.b32.xlu1 %v825_v51, %s1638_s17  ;;  %727 = vrot.lane.b32.xlu0 %v702_v15, %s1641_s24 }
  0xe8   : > { %1073 = vrot.lane.b32.xlu1 %v1061_v58, %s1640_s21  ;;  %1065 = vrot.lane.b32.xlu0 %v1060_v60, %s1638_s17 }
  0xec   : > { %838 = vrot.lane.b32.xlu1 %v826_v29, %s1640_s21  ;;  %1180 = vrot.lane.b32.xlu0 %v1175_v30, %s1638_s17 }
  0xf0   : > { %1081 = vrot.lane.b32.xlu1 %v1062_v36, %s1642_s25  ;;  %1188 = vrot.lane.b32.xlu0 %v1176_v52, %s1640_s21 }
  0xf4   : > { %846 = vrot.lane.b32.xlu1 %v827_v57, %s1642_s25  ;;  %715 = vrot.lane.b32.xlu0 %v710_v16, %s1638_s17  ;;  %s150_s17 = scalar_lea.vmem [#allocation2], %s1417_s6 }
  0xf5   : > { %s1335_s18 = sshll.u32 %s150_s17, 4  ;;  %s2270_s18 = int_to_ptr.vmem [resolvable:$true] %s1335_s18 }
  0xf6   : > { %s1539_s12 = scalar_lea.vmem %s2270_s18, 256  ;;  %p1546_p2 = scmp.lt.s32.totalorder %s2270_s18, %s1544_s29 }
  0xf7   : > { %p1540_p13 = scmp.ne.s32.totalorder %s2270_s18, %s1539_s12  ;;  %p1547_p4 = scmp.lt.s32.totalorder %s1545_s30, %s1539_s12 }
  0xf8   : > { %1089 = vrot.lane.b32.xlu1 %v1063_v10, %s1644_s28  ;;  %1196 = vrot.lane.b32.xlu0 %v1177_v17, %s1642_s25 }
  0xf9   : > { %p1541_p0 = pnand %p1540_p13, %p1715_p3  ;;  %p1548_p5 = por %p1547_p4, %p1546_p2 }
  0xfb   : > { %p1542_p1 = pneg %p1541_p0 }
  0xfc   : > { %1204 = vrot.lane.b32.xlu1 %v1178_v53, %s1644_s28  ;;  %723 = vrot.lane.b32.xlu0 %v711_v5, %s1640_s21 }
  0xfd   : > { %p1549_p6 = pnand %p1548_p5, %p1542_p1 }
 0x100   : > { %854 = vrot.lane.b32.xlu1 %v828_v18, %s1644_s28  ;;  %731 = vrot.lane.b32.xlu0 %v712_v13, %s1642_s25 }
 0x104   : > { %488 = vrot.lane.b32.xlu1 %v463_v23, %s1641_s24  ;;  %373 = vrot.lane.b32.xlu0 %v348_v27, %s1641_s24 }
 0x108   : > { %735 = vrot.lane.b32.xlu1 %v709_v47, %s1643_s26  ;;  %620 = vrot.lane.b32.xlu0 %v594_v28, %s1643_s26 }
 0x10c   : > { %377 = vrot.lane.b32.xlu1 %v358_v38, %s1642_s25  ;;  %243 = vrot.lane.b32.xlu0 %v231_v8, %s1640_s21  ;;  %s1425_s21 = sshll.u32 %s1332_s8, 7 }
 0x110   : > { %624 = vrot.lane.b32.xlu1 %v598_v0, %s1644_s28  ;;  %492 = vrot.lane.b32.xlu0 %v473_v7, %s1642_s25 }
 0x114   : > { %247 = vrot.lane.b32.xlu1 %v222_v11, %s1641_s24  ;;  %739 = vrot.lane.b32.xlu0 %v713_v24, %s1644_s28 }
 0x118   : > { %496 = vrot.lane.b32.xlu1 %v470_v39, %s1643_s26  ;;  %381 = vrot.lane.b32.xlu0 %v355_v12, %s1643_s26 }
 0x11c   : > { %385 = vrot.lane.b32.xlu1 %v359_v44, %s1644_s28  ;;  %251 = vrot.lane.b32.xlu0 %v232_v34, %s1642_s25  ;;  %v983_v44 = vsel %vm274_vm9, %v2058_v48, %v975_v45 }
 0x120   : > { %255 = vrot.lane.b32.xlu1 %v229_v59, %s1643_s26  ;;  %500 = vrot.lane.b32.xlu0 %v474_v61, %s1644_s28  ;;  %s2275_s26 = scalar_lea.hbm %s2330_s2, %s1425_s21 }
 0x124   : > { %259 = vrot.lane.b32.xlu0 %v233_v9, %s1644_s28  ;;  %s2277_s28 = scalar_lea.sflag [#allocation3], %s148_s5 }
 0x132   : > { %v366_v63 = vpop.permute.xlu1 %365 }
 0x136   : > { %v362_v54 = vpop.permute.xlu1 %361 }
 0x137   : > { %v388_v50 = vsel %vm262_vm2, %v1934_v14, %v362_v54 }
 0x138   : > { %v389_v55 = vsel %vm264_vm3, %v388_v50, %v366_v63 }
 0x13a   : > { %v370_v40 = vpop.permute.xlu1 %369  ;;  %v481_v41 = vpop.permute.xlu0 %480 }
 0x13b   : > { %v2192_v31 = vsel %vm266_vm4, %v389_v55, %v370_v40 }
 0x13e   : > { %v1070_v56 = vpop.permute.xlu1 %1069  ;;  %v477_v49 = vpop.permute.xlu0 %476 }
 0x13f   : > { %v503_v51 = vsel %vm262_vm2, %v1985_v6, %v477_v49 }
 0x140   : > { %v504_v15 = vsel %vm264_vm3, %v503_v51, %v481_v41 }
 0x142   : > { %v835_v58 = vpop.permute.xlu1 %834  ;;  %v485_v60 = vpop.permute.xlu0 %484 }
 0x143   : > { %v2198_v20 = vsel %vm266_vm4, %v504_v15, %v485_v60 }
 0x146   : > { %v1078_v14 = vpop.permute.xlu1 %1077  ;;  %v1185_v29 = vpop.permute.xlu0 %1184 }
 0x14a   : > { %v843_v30 = vpop.permute.xlu1 %842  ;;  %v1193_v36 = vpop.permute.xlu0 %1192 }
 0x14e   : > { %v1086_v52 = vpop.permute.xlu1 %1085  ;;  %v720_v57 = vpop.permute.xlu0 %719 }
 0x152   : > { %v851_v16 = vpop.permute.xlu1 %850  ;;  %v1201_v10 = vpop.permute.xlu0 %1200 }
 0x156   : > { %v831_v17 = vpop.permute.xlu1 %830  ;;  %v728_v53 = vpop.permute.xlu0 %727 }
 0x157   : > { %v857_v54 = vsel %vm262_vm2, %v2073_v32, %v831_v17 }
 0x158   : > { %v858_v50 = vsel %vm264_vm3, %v857_v54, %v835_v58 }
 0x15a   : > { %v1074_v5 = vpop.permute.xlu1 %1073  ;;  %v1066_v18 = vpop.permute.xlu0 %1065 }
 0x15b   : > { %v1092_v6 = vsel %vm262_vm2, %v2083_v21, %v1066_v18 }
 0x15c   : > { %v1093_v35 = vsel %vm264_vm3, %v1092_v6, %v1070_v56 }
 0x15d   : > { %v1094_v1 = vsel %vm266_vm4, %v1093_v35, %v1074_v5 }
 0x15e   : > { %v839_v13 = vpop.permute.xlu1 %838  ;;  %v1181_v33 = vpop.permute.xlu0 %1180  ;;  %v1095_v3 = vsel %vm268_vm5, %v1094_v1, %v1078_v14 }
 0x15f   : > { %v1207_v28 = vsel %vm262_vm2, %v2092_v19, %v1181_v33  ;;  %v859_v48 = vsel %vm266_vm4, %v858_v50, %v839_v13  ;;  %v263_v33 = vsel %vm262_vm2, %v1874_v26, %v2186_v46 }
 0x160   : > { %v1208_v47 = vsel %vm264_vm3, %v1207_v28, %v1185_v29  ;;  %v860_v41 = vsel %vm268_vm5, %v859_v48, %v843_v30 }
 0x162   : > { %v1082_v23 = vpop.permute.xlu1 %1081  ;;  %v1189_v27 = vpop.permute.xlu0 %1188 }
 0x163   : > { %v1096_v37 = vsel %vm270_vm6, %v1095_v3, %v1082_v23  ;;  %v1209_v21 = vsel %vm266_vm4, %v1208_v47, %v1189_v27 }
 0x164   : > { %v1097_v0 = vsel %vm272_vm7, %v1096_v37, %v1086_v52  ;;  %v1210_v2 = vsel %vm268_vm5, %v1209_v21, %v1193_v36 }
 0x166   : > { %v847_v8 = vpop.permute.xlu1 %846  ;;  %v716_v62 = vpop.permute.xlu0 %715 }
 0x167   : > { %v742_v45 = vsel %vm262_vm2, %v2104_v4, %v716_v62  ;;  %v861_v51 = vsel %vm270_vm6, %v860_v41, %v847_v8 }
 0x168   : > { %v743_v15 = vsel %vm264_vm3, %v742_v45, %v720_v57  ;;  %v862_v32 = vsel %vm272_vm7, %v861_v51, %v851_v16 }
 0x16a   : > { %v1090_v38 = vpop.permute.xlu1 %1089  ;;  %v1197_v7 = vpop.permute.xlu0 %1196 }
 0x16b   : > { %v1098_v19 = vsel %vm274_vm9, %v1097_v0, %v1090_v38  ;;  %v1211_v11 = vsel %vm270_vm6, %v1210_v2, %v1197_v7 }
 0x16c   : > { %v1224_v24 = vrot.slane %v1098_v19, 4  ;;  %v1212_v34 = vsel %vm272_vm7, %v1211_v11, %v1201_v10  ;;  %v1232_v11 = vld [vmem:[%s2329_s1 + $0x8] sm:$0xff] }
 0x16e   : > { %v1205_v39 = vpop.permute.xlu1 %1204  ;;  %v724_v12 = vpop.permute.xlu0 %723  ;;  %v1230_v43 = vsel %vm1226_vm10, %v983_v44, %v1224_v24 }
 0x16f   : > { %v1213_v42 = vsel %vm274_vm9, %v1212_v34, %v1205_v39  ;;  %v744_v60 = vsel %vm266_vm4, %v743_v15, %v724_v12 }
 0x170   : > { %1435 = vmatprep.subr.msk.mxu0 %vm1226_vm10, %v1213_v42  ;;  %v745_v36 = vsel %vm268_vm5, %v744_v60, %v728_v53 }
 0x171   : > { %1436 = vmatpush3.msk.msra.mxu0 %vm1226_vm10, %v1213_v42 }
 0x172   : > { %v855_v59 = vpop.permute.xlu1 %854  ;;  %1437 = vmatprep.subr.mxu0 %v1230_v43  ;;  %v732_v61 = vpop.permute.xlu0 %731 }
 0x173   : > { %1438 = vmatpush3.msra.mxu0 %v1230_v43  ;;  %v863_v29 = vsel %vm274_vm9, %v862_v32, %v855_v59  ;;  %v746_v4 = vsel %vm270_vm6, %v745_v36, %v732_v61 }
 0x174   : > { %v1221_v52 = vrot.slane %v863_v29, 4 }
 0x176   : > { %v489_v9 = vpop.permute.xlu1 %488  ;;  %v374_v63 = vpop.permute.xlu0 %373 }
 0x177   : > { %v506_v23 = vsel %vm268_vm5, %v2198_v20, %v489_v9  ;;  %v391_v27 = vsel %vm268_vm5, %v2192_v31, %v374_v63 }
 0x17a   : > { %v736_v55 = vpop.permute.xlu1 %735  ;;  %v621_v40 = vpop.permute.xlu0 %620 }
 0x17b   : > { %v747_v30 = vsel %vm272_vm7, %v746_v4, %v736_v55  ;;  %v632_v6 = vsel %vm272_vm7, %v2043_v22, %v621_v40  ;;  %v265_v22 = vsel %vm264_vm3, %v263_v33, %v2184_v25 }
 0x17e   : > { %v378_v56 = vpop.permute.xlu1 %377  ;;  %v244_v49 = vpop.permute.xlu0 %243 }
 0x17f   : > { %v392_v28 = vsel %vm270_vm6, %v391_v27, %v378_v56  ;;  %v267_v8 = vsel %vm266_vm4, %v265_v22, %v244_v49 }
 0x182   : > { %v625_v58 = vpop.permute.xlu1 %624  ;;  %v493_v14 = vpop.permute.xlu0 %492 }
 0x183   : > { %v633_v35 = vsel %vm274_vm9, %v632_v6, %v625_v58  ;;  %v507_v1 = vsel %vm270_vm6, %v506_v23, %v493_v14 }
 0x184   : > { %v1218_v3 = vrot.slane %v633_v35, 4 }
 0x186   : > { %v248_v10 = vpop.permute.xlu1 %247  ;;  %v740_v17 = vpop.permute.xlu0 %739 }
 0x187   : > { %v748_v5 = vsel %vm274_vm9, %v747_v30, %v740_v17  ;;  %v269_v37 = vsel %vm268_vm5, %v267_v8, %v248_v10 }
 0x188   : > { %v1229_v57 = vsel %vm1226_vm10, %v748_v5, %v1221_v52 }
 0x189   : > { %1439 = vmatprep.subr.mxu0 %v1229_v57 }
 0x18a   : > { %v497_v18 = vpop.permute.xlu1 %496  ;;  %1440 = vmatpush3.msra.mxu0 %v1229_v57  ;;  %v382_v16 = vpop.permute.xlu0 %381 }
 0x18b   : > { %v508_v47 = vsel %vm272_vm7, %v507_v1, %v497_v18  ;;  %v393_v26 = vsel %vm272_vm7, %v392_v28, %v382_v16 }
 0x18e   : > { %v386_v13 = vpop.permute.xlu1 %385  ;;  %v252_v53 = vpop.permute.xlu0 %251 }
 0x18f   : > { %v394_v20 = vsel %vm274_vm9, %v393_v26, %v386_v13  ;;  %v271_v25 = vsel %vm270_vm6, %v269_v37, %v252_v53 }
 0x190   : > { %v1215_v38 = vrot.slane %v394_v20, 4 }
 0x192   : > { %v501_v46 = vpop.permute.xlu0 %500  ;;  %v256_v62 = vpop.permute.xlu1 %255 }
 0x193   : > { %v509_v31 = vsel %vm274_vm9, %v508_v47, %v501_v46  ;;  %v273_v0 = vsel %vm272_vm7, %v271_v25, %v256_v62 }
 0x194   : > { %v1228_v21 = vsel %vm1226_vm10, %v509_v31, %v1218_v3 }
 0x195   : > { %1441 = vmatprep.subr.mxu0 %v1228_v21 }
 0x196   : > { %1442 = vmatpush3.msra.mxu0 %v1228_v21  ;;  %v260_v2 = vpop.permute.xlu0 %259 }
 0x197   : > { %v275_v7 = vsel %vm274_vm9, %v273_v0, %v260_v2 }
 0x198   : > { %v1227_v19 = vsel %vm1226_vm10, %v275_v7, %v1215_v38 }
 0x199   : > { %1443 = vmatprep.subr.mxu0 %v1227_v19 }
 0x19a   : > { %1444 = vmatpush3.msra.mxu0 %v1227_v19 }
 0x19b   : > { %1446 = vmatmul.mubr.msk.f32.vlgmr.msra.gmra.mxu0 %vm1233_vm8, %v1232_v11 }
 0x25b   : > { %v1447_v24 = vpop.f32.mrf.mxu0 }
 0x25c   : > { %1319 = vst [vmem:[%s150_s17 + $0x8] sm:$0xff] %v1447_v24 }
 0x25d   : > { %v1309_v39 = vpop.f32.mrf.mxu0 }
 0x25e   : > { %1318 = vst [vmem:[%s150_s17] sm:$0xff] %v1309_v39 }
 0x25f   : > { %1552 = shalt.err (!%p1549_p6)
}
 0x260   : > { %s1553_s3 = scalar_lea.hbm %s2275_s26, 256  ;;  %s1557_s6 = scalar_lea.hbm %s2330_s2, 1024 }
 0x261   : > { %p1554_p7 = scmp.ne.s32.totalorder %s2275_s26, %s1553_s3  ;;  %p1558_p11 = scmp.lt.s32.totalorder %s2275_s26, %s2330_s2 }
 0x262   : > { %p1559_p12 = scmp.lt.s32.totalorder %s1557_s6, %s1553_s3 }
 0x263   : > { %p1555_p9 = pnand %p1554_p7, %p1715_p3 }
 0x264   : > { %p1560_p13 = por %p1559_p12, %p1558_p11 }
 0x265   : > { %p1556_p10 = pneg %p1555_p9 }
 0x267   : > { %p1561_p0 = pnand %p1560_p13, %p1556_p10 }
 0x269   : > { %1564 = shalt.err (!%p1561_p0)
}
 0x26a   : > { %s1646_s17 = smov 128   ;;  %s1647_s21 = smov 256  }
 0x26b   : > { %s1648_s24 = smov 8  }
 0x26c   : > { %1449 = dma.vmem_to_hbm [thread:$0]  (%p1715_p3), %s2270_s18, 256, %s2275_s26, %s2277_s28, %s1646_s17, %s1647_s21, %s1648_s24  }
 0x26d PF: > { %p1455_p1 = scmp.ge.s32.totalorder %s1631_s16, 2  ;;  %s1350_s25 = sand.u32 1, %s1603_s9  }
 0x26e   : > { %s1351_s12 = scalar_lea.sflag [#allocation3], %s1350_s25 }
 0x26f   : > { %p1452_p2 = pnand %p1455_p1, %p1724_p8 }
 0x271   : > { %p1453_p4 = pneg %p1452_p2 }
 0x273   : > { %1598 = dma.done.wait (%p1453_p4), %s1351_s12, 256  }
 0x274   : > { %1600 = vsyncadd (%p1453_p4), %s1351_s12, 4294967040  ;;  %s15_s16 = sadd.s32 1, %s1631_s16   ;;  %s2333_s9 = smov %s1607_s10 }
 0x275   : > { %p12_p5 = scmp.ge.s32.totalorder %s15_s16, 6   ;;  %s2334_s10 = smov %s1611_s11 }
 0x276   : > { %s2335_s11 = smov %s1733_s27  ;;  %s2336_s12 = smov %s1623_s14 }
 0x277   : > { %s2337_s13 = smov %s1627_s15  ;;  %s2338_s14 = smov %s2341_s19 }
 0x278   : > { %s2339_s15 = smov %s2345_s20  ;;  %14 = sbr.rel (!%p12_p5) target bundleno = 5 (0x5), region = 64 }
 0x27d   :  { %1356 = vsyncpa [#allocation3], 1 }
 0x27e   :  { %1358 = vsyncpa [#allocation3 + $0x1], 1 }

</bundles_post_ra>
